<compile_context>
chip_gen: v7x
topology: tpu7x:2x2x1
jax: 0.10.0
libtpu: 0.0.40
codegen_flags: <defaults>
</compile_context>

<pallas_src>
import functools

import jax
import jax.numpy as jnp
from jax import lax
from jax.experimental import pallas as pl
from jax.experimental.pallas import tpu as pltpu


def _instance_loss_kernel(
    zi_row_ref, zj_row_ref, zi_col_ref, zj_col_ref,   # inputs
    o_ref,                                            # output (8, 128) per row tile
    m_i, l_i, m_j, l_j, pos_scr,                      # VMEM scratch
    *, inv_temp: float,
):
    i = pl.program_id(0)
    j = pl.program_id(1)
    nj = pl.num_programs(1)

    # Row blocks in their native dtype; fold 1/T into the matmul operand once
    # per tile (O(TM*D) VPU work instead of O(TM*TN) per score tile).
    zi_row = zi_row_ref[...]
    zj_row = zj_row_ref[...]
    inv_t = jnp.asarray(inv_temp, dtype=zi_row.dtype)
    zi_row_s = zi_row * inv_t
    zj_row_s = zj_row * inv_t

    @pl.when(j == 0)
    def _init():
        m_i[...] = jnp.full_like(m_i, -jnp.inf)
        l_i[...] = jnp.zeros_like(l_i)
        m_j[...] = jnp.full_like(m_j, -jnp.inf)
        l_j[...] = jnp.zeros_like(l_j)
        # Positive logit per row: (z_i[r] . z_j[r]) / T (shared by the two
        # mirrored rows of the concatenated batch), computed in f32 on the VPU.
        pos_scr[...] = jnp.sum(
            zi_row.astype(jnp.float32) * zj_row.astype(jnp.float32),
            axis=-1, keepdims=True,
        ) * jnp.float32(inv_temp)

    # Four quadrant score tiles; contract last dims (trans_b style, no
    # transposed copy of the column blocks), f32 accumulation on the MXU.
    dn = (((1,), (1,)), ((), ()))
    zi_col = zi_col_ref[...]
    zj_col = zj_col_ref[...]
    s_ii = lax.dot_general(zi_row_s, zi_col, dn, preferred_element_type=jnp.float32)
    s_ij = lax.dot_general(zi_row_s, zj_col, dn, preferred_element_type=jnp.float32)
    s_ji = lax.dot_general(zj_row_s, zi_col, dn, preferred_element_type=jnp.float32)
    s_jj = lax.dot_general(zj_row_s, zj_col, dn, preferred_element_type=jnp.float32)

    # Branch-free self-similarity mask via global indices (only the ii / jj
    # quadrants contain the diagonal of the concatenated similarity matrix).
    tm, tn = s_ii.shape
    row_g = i * tm + lax.broadcasted_iota(jnp.int32, (tm, tn), 0)
    col_g = j * tn + lax.broadcasted_iota(jnp.int32, (tm, tn), 1)
    diag = row_g == col_g
    neg_inf = jnp.float32(-jnp.inf)
    s_ii = jnp.where(diag, neg_inf, s_ii)
    s_jj = jnp.where(diag, neg_inf, s_jj)

    def _update(m_ref, l_ref, s_a, s_b):
        # Online logsumexp update over the two score tiles for this row half.
        m_prev = m_ref[...]
        m_new = jnp.maximum(
            m_prev,
            jnp.maximum(jnp.max(s_a, axis=-1, keepdims=True),
                        jnp.max(s_b, axis=-1, keepdims=True)),
        )
        alpha = jnp.exp(m_prev - m_new)
        p = (jnp.sum(jnp.exp(s_a - m_new), axis=-1, keepdims=True)
             + jnp.sum(jnp.exp(s_b - m_new), axis=-1, keepdims=True))
        l_ref[...] = alpha * l_ref[...] + p
        m_ref[...] = m_new

    _update(m_i, l_i, s_ii, s_ij)   # rows from the z_i half
    _update(m_j, l_j, s_ji, s_jj)   # rows from the z_j half

    @pl.when(j == nj - 1)
    def _finalize():
        lse_i = m_i[...] + jnp.log(l_i[...])     # (TM, 1)
        lse_j = m_j[...] + jnp.log(l_j[...])     # (TM, 1)
        pos = pos_scr[...]
        partial = jnp.sum((lse_i - pos) + (lse_j - pos))   # scalar per row tile
        o_ref[...] = jnp.broadcast_to(jnp.reshape(partial, (1, 1)), o_ref.shape)


def _pick_row_tile(train_num: int, block_rows: int) -> int:
    """Largest divisor of train_num that is <= block_rows and sublane-aligned
    (multiple of 8), else fall back to a single full-extent tile."""
    if train_num <= block_rows:
        return train_num
    for t in range(min(block_rows, train_num), 0, -1):
        if train_num % t == 0 and t % 8 == 0:
            return t
    return train_num


def instance_loss(z_i, z_j, *, train_num: int, temperature: float,
                  block_rows: int = 128):
    """SimCLR instance loss.  z_i, z_j: (train_num, D), any float dtype."""
    assert z_i.shape == z_j.shape and z_i.shape[0] == train_num
    D = z_i.shape[1]
    N = 2 * train_num

    tm = _pick_row_tile(train_num, block_rows)
    tn = tm                       # square tiles keep the grid simple
    n_row_tiles = train_num // tm
    n_col_tiles = train_num // tn

    kernel = functools.partial(_instance_loss_kernel, inv_temp=1.0 / temperature)

    itemsize = jnp.dtype(z_i.dtype).itemsize
    grid_steps = n_row_tiles * n_col_tiles
    cost = pl.CostEstimate(
        flops=2 * N * N * D,                              # four quadrant matmuls
        transcendentals=N * N + 2 * N,                    # exp per score + alpha/log
        bytes_accessed=grid_steps * (2 * tm * D + 2 * tn * D) * itemsize
        + n_row_tiles * 8 * 128 * 4,
    )

    out = pl.pallas_call(
        kernel,
        out_shape=jax.ShapeDtypeStruct((n_row_tiles * 8, 128), jnp.float32),
        grid_spec=pltpu.PrefetchScalarGridSpec(
            num_scalar_prefetch=0,
            grid=(n_row_tiles, n_col_tiles),
            in_specs=[
                pl.BlockSpec((tm, D), lambda i, j: (i, 0)),   # z_i row block
                pl.BlockSpec((tm, D), lambda i, j: (i, 0)),   # z_j row block (pairs)
                pl.BlockSpec((tn, D), lambda i, j: (j, 0)),   # z_i column block
                pl.BlockSpec((tn, D), lambda i, j: (j, 0)),   # z_j column block
            ],
            out_specs=pl.BlockSpec((8, 128), lambda i, j: (i, 0)),
            scratch_shapes=[
                pltpu.VMEM((tm, 1), jnp.float32),   # m  (z_i-half rows)
                pltpu.VMEM((tm, 1), jnp.float32),   # l  (z_i-half rows)
                pltpu.VMEM((tm, 1), jnp.float32),   # m  (z_j-half rows)
                pltpu.VMEM((tm, 1), jnp.float32),   # l  (z_j-half rows)
                pltpu.VMEM((tm, 1), jnp.float32),   # positive logits
            ],
        ),
        compiler_params=pltpu.CompilerParams(
            dimension_semantics=("parallel", "arbitrary"),
        ),
        cost_estimate=cost,
    )(z_i, z_j, z_i, z_j)

    partials = out.reshape(n_row_tiles, 8, 128)[:, 0, 0]
    return jnp.sum(partials) / jnp.float32(N)


def _instance_loss_ref(z_i, z_j, *, train_num: int, temperature: float):
    """Pure-JAX reference mirroring the PyTorch forward, for validation."""
    N = 2 * train_num
    z = jnp.concatenate([z_i, z_j], axis=0).astype(jnp.float32)
    sim = (z @ z.T) / temperature
    pos = jnp.concatenate(
        [jnp.diagonal(sim, offset=train_num), jnp.diagonal(sim, offset=-train_num)]
    ).reshape(N, 1)
    eye = jnp.eye(N, dtype=bool)
    sim_masked = jnp.where(eye, -jnp.inf, sim)
    lse = jax.scipy.special.logsumexp(sim_masked, axis=-1, keepdims=True)
    return jnp.mean(lse - pos)


if __name__ == "__main__":
    train_num = 16
    hidden = 32
    temperature = 0.5

    key = jax.random.PRNGKey(0)
    k1, k2 = jax.random.split(key)
    # bf16 inputs: the kernel feeds the MXU in the input dtype (no upcast).
    z_i = jax.random.normal(k1, (train_num, hidden), dtype=jnp.float32).astype(jnp.bfloat16)
    z_j = jax.random.normal(k2, (train_num, hidden), dtype=jnp.float32).astype(jnp.bfloat16)

    ref = _instance_loss_ref(z_i, z_j, train_num=train_num, temperature=temperature)

    # Multi-tile path: 2x2 grid exercises diagonal masking, off-diagonal tiles
    # and the online logsumexp across column tiles.
    loss_tiled = instance_loss(z_i, z_j, train_num=train_num,
                               temperature=temperature, block_rows=8)
    jax.block_until_ready(loss_tiled)
    assert jnp.allclose(loss_tiled, ref, rtol=1e-3, atol=1e-3), (loss_tiled, ref)

    # Default (single-tile) path.
    loss_single = instance_loss(z_i, z_j, train_num=train_num,
                                temperature=temperature)
    jax.block_until_ready(loss_single)
    assert jnp.allclose(loss_single, ref, rtol=1e-3, atol=1e-3), (loss_single, ref)

    print("KERNEL_OK")
</pallas_src>

<mosaic_0001>
module attributes {stable_mosaic.version = 11 : i64} {
  func.func @_instance_loss_kernel(%arg0: i32, %arg1: i32, %arg2: memref<8x32xbf16, #tpu.memory_space<vmem>>, %arg3: memref<8x32xbf16, #tpu.memory_space<vmem>>, %arg4: memref<8x32xbf16, #tpu.memory_space<vmem>>, %arg5: memref<8x32xbf16, #tpu.memory_space<vmem>>, %arg6: memref<8x128xf32, #tpu.memory_space<vmem>>, %arg7: memref<8x1xf32, #tpu.memory_space<vmem>>, %arg8: memref<8x1xf32, #tpu.memory_space<vmem>>, %arg9: memref<8x1xf32, #tpu.memory_space<vmem>>, %arg10: memref<8x1xf32, #tpu.memory_space<vmem>>, %arg11: memref<8x1xf32, #tpu.memory_space<vmem>>) attributes {dimension_semantics = [#tpu.dimension_semantics<parallel>, #tpu.dimension_semantics<arbitrary>], iteration_bounds = array<i64: 2, 2>, scalar_prefetch = 0 : i64, scratch_operands = 5 : i64, tpu.core_type = #tpu.core_type<tc>, window_params = [{transform_indices = @transform_0, window_bounds = array<i64: 8, 32>}, {transform_indices = @transform_1, window_bounds = array<i64: 8, 32>}, {transform_indices = @transform_2, window_bounds = array<i64: 8, 32>}, {transform_indices = @transform_3, window_bounds = array<i64: 8, 32>}, {transform_indices = @transform_4, window_bounds = array<i64: 8, 128>}]} {
    %c0 = arith.constant 0 : index
    %c0_0 = arith.constant 0 : index
    %0 = vector.load %arg2[%c0, %c0_0] : memref<8x32xbf16, #tpu.memory_space<vmem>>, vector<8x32xbf16>
    %c0_1 = arith.constant 0 : index
    %c0_2 = arith.constant 0 : index
    %1 = vector.load %arg3[%c0_1, %c0_2] : memref<8x32xbf16, #tpu.memory_space<vmem>>, vector<8x32xbf16>
    %cst = arith.constant 2.000000e+00 : bf16
    %2 = vector.broadcast %cst : bf16 to vector<8x32xbf16>
    %3 = arith.mulf %0, %2 : vector<8x32xbf16>
    %cst_3 = arith.constant 2.000000e+00 : bf16
    %4 = vector.broadcast %cst_3 : bf16 to vector<8x32xbf16>
    %5 = arith.mulf %1, %4 : vector<8x32xbf16>
    %c0_i32 = arith.constant 0 : i32
    %6 = arith.cmpi eq, %arg1, %c0_i32 : i32
    %7 = arith.extui %6 : i1 to i32
    %c0_i32_4 = arith.constant 0 : i32
    %8 = arith.cmpi ne, %7, %c0_i32_4 : i32
    scf.if %8 {
      %cst_41 = arith.constant 0xFF800000 : f32
      %81 = vector.broadcast %cst_41 : f32 to vector<8x1xf32>
      %c0_42 = arith.constant 0 : index
      %c0_43 = arith.constant 0 : index
      %82 = vector.load %arg7[%c0_42, %c0_43] : memref<8x1xf32, #tpu.memory_space<vmem>>, vector<8x1xf32>
      tpu.vector_store %arg7[%c0_42, %c0_43], %81 {strides = array<i32>} : memref<8x1xf32, #tpu.memory_space<vmem>>, vector<8x1xf32>,
      %cst_44 = arith.constant 0.000000e+00 : f32
      %83 = vector.broadcast %cst_44 : f32 to vector<8x1xf32>
      %c0_45 = arith.constant 0 : index
      %c0_46 = arith.constant 0 : index
      %84 = vector.load %arg8[%c0_45, %c0_46] : memref<8x1xf32, #tpu.memory_space<vmem>>, vector<8x1xf32>
      tpu.vector_store %arg8[%c0_45, %c0_46], %83 {strides = array<i32>} : memref<8x1xf32, #tpu.memory_space<vmem>>, vector<8x1xf32>,
      %cst_47 = arith.constant 0xFF800000 : f32
      %85 = vector.broadcast %cst_47 : f32 to vector<8x1xf32>
      %c0_48 = arith.constant 0 : index
      %c0_49 = arith.constant 0 : index
      %86 = vector.load %arg9[%c0_48, %c0_49] : memref<8x1xf32, #tpu.memory_space<vmem>>, vector<8x1xf32>
      tpu.vector_store %arg9[%c0_48, %c0_49], %85 {strides = array<i32>} : memref<8x1xf32, #tpu.memory_space<vmem>>, vector<8x1xf32>,
      %cst_50 = arith.constant 0.000000e+00 : f32
      %87 = vector.broadcast %cst_50 : f32 to vector<8x1xf32>
      %c0_51 = arith.constant 0 : index
      %c0_52 = arith.constant 0 : index
      %88 = vector.load %arg10[%c0_51, %c0_52] : memref<8x1xf32, #tpu.memory_space<vmem>>, vector<8x1xf32>
      tpu.vector_store %arg10[%c0_51, %c0_52], %87 {strides = array<i32>} : memref<8x1xf32, #tpu.memory_space<vmem>>, vector<8x1xf32>,
      %89 = arith.extf %0 : vector<8x32xbf16> to vector<8x32xf32>
      %90 = arith.extf %1 : vector<8x32xbf16> to vector<8x32xf32>
      %91 = arith.mulf %89, %90 : vector<8x32xf32>
      %cst_53 = arith.constant dense<0.000000e+00> : vector<8xf32>
      %92 = vector.multi_reduction <add>, %91, %cst_53 [1] : vector<8x32xf32> to vector<8xf32>
      %93 = vector.shape_cast %92 : vector<8xf32> to vector<8x1xf32>
      %cst_54 = arith.constant 2.000000e+00 : f32
      %94 = vector.broadcast %cst_54 : f32 to vector<8x1xf32>
      %95 = arith.mulf %93, %94 : vector<8x1xf32>
      %c0_55 = arith.constant 0 : index
      %c0_56 = arith.constant 0 : index
      %96 = vector.load %arg11[%c0_55, %c0_56] : memref<8x1xf32, #tpu.memory_space<vmem>>, vector<8x1xf32>
      tpu.vector_store %arg11[%c0_55, %c0_56], %95 {strides = array<i32>} : memref<8x1xf32, #tpu.memory_space<vmem>>, vector<8x1xf32>,
    } else {
    }
    %c0_5 = arith.constant 0 : index
    %c0_6 = arith.constant 0 : index
    %9 = vector.load %arg4[%c0_5, %c0_6] : memref<8x32xbf16, #tpu.memory_space<vmem>>, vector<8x32xbf16>
    %c0_7 = arith.constant 0 : index
    %c0_8 = arith.constant 0 : index
    %10 = vector.load %arg5[%c0_7, %c0_8] : memref<8x32xbf16, #tpu.memory_space<vmem>>, vector<8x32xbf16>
    %cst_9 = arith.constant dense<0.000000e+00> : vector<8x8xf32>
    %11 = tpu.matmul %3, %9, %cst_9 {dimension_numbers = #tpu.dot_dimension_numbers<[1], [1], [0], [0], [0, 0, 1, 0], [], []>} : vector<8x32xbf16>, vector<8x32xbf16>, vector<8x8xf32> -> vector<8x8xf32>
    %cst_10 = arith.constant dense<0.000000e+00> : vector<8x8xf32>
    %12 = tpu.matmul %3, %10, %cst_10 {dimension_numbers = #tpu.dot_dimension_numbers<[1], [1], [0], [0], [0, 0, 1, 0], [], []>} : vector<8x32xbf16>, vector<8x32xbf16>, vector<8x8xf32> -> vector<8x8xf32>
    %cst_11 = arith.constant dense<0.000000e+00> : vector<8x8xf32>
    %13 = tpu.matmul %5, %9, %cst_11 {dimension_numbers = #tpu.dot_dimension_numbers<[1], [1], [0], [0], [0, 0, 1, 0], [], []>} : vector<8x32xbf16>, vector<8x32xbf16>, vector<8x8xf32> -> vector<8x8xf32>
    %cst_12 = arith.constant dense<0.000000e+00> : vector<8x8xf32>
    %14 = tpu.matmul %5, %10, %cst_12 {dimension_numbers = #tpu.dot_dimension_numbers<[1], [1], [0], [0], [0, 0, 1, 0], [], []>} : vector<8x32xbf16>, vector<8x32xbf16>, vector<8x8xf32> -> vector<8x8xf32>
    %c8_i32 = arith.constant 8 : i32
    %15 = arith.muli %arg0, %c8_i32 : i32
    %16 = tpu.iota {dimensions = array<i32: 0>} : vector<8x8xi32>
    %17 = vector.broadcast %15 : i32 to vector<8x8xi32>
    %18 = arith.addi %17, %16 : vector<8x8xi32>
    %c8_i32_13 = arith.constant 8 : i32
    %19 = arith.muli %arg1, %c8_i32_13 : i32
    %20 = tpu.iota {dimensions = array<i32: 1>} : vector<8x8xi32>
    %21 = vector.broadcast %19 : i32 to vector<8x8xi32>
    %22 = arith.addi %21, %20 : vector<8x8xi32>
    %23 = arith.cmpi eq, %18, %22 : vector<8x8xi32>
    %cst_14 = arith.constant 0xFF800000 : f32
    %24 = vector.broadcast %cst_14 : f32 to vector<8x8xf32>
    %25 = arith.select %23, %24, %11 : vector<8x8xi1>, vector<8x8xf32>
    %cst_15 = arith.constant 0xFF800000 : f32
    %26 = vector.broadcast %cst_15 : f32 to vector<8x8xf32>
    %27 = arith.select %23, %26, %14 : vector<8x8xi1>, vector<8x8xf32>
    %c0_16 = arith.constant 0 : index
    %c0_17 = arith.constant 0 : index
    %28 = vector.load %arg7[%c0_16, %c0_17] : memref<8x1xf32, #tpu.memory_space<vmem>>, vector<8x1xf32>
    %cst_18 = arith.constant dense<0xFF800000> : vector<8xf32>
    %29 = vector.multi_reduction <maximumf>, %25, %cst_18 [1] : vector<8x8xf32> to vector<8xf32>
    %30 = vector.shape_cast %29 : vector<8xf32> to vector<8x1xf32>
    %cst_19 = arith.constant dense<0xFF800000> : vector<8xf32>
    %31 = vector.multi_reduction <maximumf>, %12, %cst_19 [1] : vector<8x8xf32> to vector<8xf32>
    %32 = vector.shape_cast %31 : vector<8xf32> to vector<8x1xf32>
    %33 = arith.maximumf %30, %32 : vector<8x1xf32>
    %34 = arith.maximumf %28, %33 : vector<8x1xf32>
    %35 = arith.subf %28, %34 : vector<8x1xf32>
    %36 = math.exp %35 : vector<8x1xf32>
    %37 = vector.broadcast %34 : vector<8x1xf32> to vector<8x8xf32>
    %38 = arith.subf %25, %37 : vector<8x8xf32>
    %39 = math.exp %38 : vector<8x8xf32>
    %cst_20 = arith.constant dense<0.000000e+00> : vector<8xf32>
    %40 = vector.multi_reduction <add>, %39, %cst_20 [1] : vector<8x8xf32> to vector<8xf32>
    %41 = vector.shape_cast %40 : vector<8xf32> to vector<8x1xf32>
    %42 = vector.broadcast %34 : vector<8x1xf32> to vector<8x8xf32>
    %43 = arith.subf %12, %42 : vector<8x8xf32>
    %44 = math.exp %43 : vector<8x8xf32>
    %cst_21 = arith.constant dense<0.000000e+00> : vector<8xf32>
    %45 = vector.multi_reduction <add>, %44, %cst_21 [1] : vector<8x8xf32> to vector<8xf32>
    %46 = vector.shape_cast %45 : vector<8xf32> to vector<8x1xf32>
    %47 = arith.addf %41, %46 : vector<8x1xf32>
    %c0_22 = arith.constant 0 : index
    %c0_23 = arith.constant 0 : index
    %48 = vector.load %arg8[%c0_22, %c0_23] : memref<8x1xf32, #tpu.memory_space<vmem>>, vector<8x1xf32>
    %49 = arith.mulf %36, %48 : vector<8x1xf32>
    %50 = arith.addf %49, %47 : vector<8x1xf32>
    %c0_24 = arith.constant 0 : index
    %c0_25 = arith.constant 0 : index
    %51 = vector.load %arg8[%c0_24, %c0_25] : memref<8x1xf32, #tpu.memory_space<vmem>>, vector<8x1xf32>
    tpu.vector_store %arg8[%c0_24, %c0_25], %50 {strides = array<i32>} : memref<8x1xf32, #tpu.memory_space<vmem>>, vector<8x1xf32>,
    %c0_26 = arith.constant 0 : index
    %c0_27 = arith.constant 0 : index
    %52 = vector.load %arg7[%c0_26, %c0_27] : memref<8x1xf32, #tpu.memory_space<vmem>>, vector<8x1xf32>
    tpu.vector_store %arg7[%c0_26, %c0_27], %34 {strides = array<i32>} : memref<8x1xf32, #tpu.memory_space<vmem>>, vector<8x1xf32>,
    %c0_28 = arith.constant 0 : index
    %c0_29 = arith.constant 0 : index
    %53 = vector.load %arg9[%c0_28, %c0_29] : memref<8x1xf32, #tpu.memory_space<vmem>>, vector<8x1xf32>
    %cst_30 = arith.constant dense<0xFF800000> : vector<8xf32>
    %54 = vector.multi_reduction <maximumf>, %13, %cst_30 [1] : vector<8x8xf32> to vector<8xf32>
    %55 = vector.shape_cast %54 : vector<8xf32> to vector<8x1xf32>
    %cst_31 = arith.constant dense<0xFF800000> : vector<8xf32>
    %56 = vector.multi_reduction <maximumf>, %27, %cst_31 [1] : vector<8x8xf32> to vector<8xf32>
    %57 = vector.shape_cast %56 : vector<8xf32> to vector<8x1xf32>
    %58 = arith.maximumf %55, %57 : vector<8x1xf32>
    %59 = arith.maximumf %53, %58 : vector<8x1xf32>
    %60 = arith.subf %53, %59 : vector<8x1xf32>
    %61 = math.exp %60 : vector<8x1xf32>
    %62 = vector.broadcast %59 : vector<8x1xf32> to vector<8x8xf32>
    %63 = arith.subf %13, %62 : vector<8x8xf32>
    %64 = math.exp %63 : vector<8x8xf32>
    %cst_32 = arith.constant dense<0.000000e+00> : vector<8xf32>
    %65 = vector.multi_reduction <add>, %64, %cst_32 [1] : vector<8x8xf32> to vector<8xf32>
    %66 = vector.shape_cast %65 : vector<8xf32> to vector<8x1xf32>
    %67 = vector.broadcast %59 : vector<8x1xf32> to vector<8x8xf32>
    %68 = arith.subf %27, %67 : vector<8x8xf32>
    %69 = math.exp %68 : vector<8x8xf32>
    %cst_33 = arith.constant dense<0.000000e+00> : vector<8xf32>
    %70 = vector.multi_reduction <add>, %69, %cst_33 [1] : vector<8x8xf32> to vector<8xf32>
    %71 = vector.shape_cast %70 : vector<8xf32> to vector<8x1xf32>
    %72 = arith.addf %66, %71 : vector<8x1xf32>
    %c0_34 = arith.constant 0 : index
    %c0_35 = arith.constant 0 : index
    %73 = vector.load %arg10[%c0_34, %c0_35] : memref<8x1xf32, #tpu.memory_space<vmem>>, vector<8x1xf32>
    %74 = arith.mulf %61, %73 : vector<8x1xf32>
    %75 = arith.addf %74, %72 : vector<8x1xf32>
    %c0_36 = arith.constant 0 : index
    %c0_37 = arith.constant 0 : index
    %76 = vector.load %arg10[%c0_36, %c0_37] : memref<8x1xf32, #tpu.memory_space<vmem>>, vector<8x1xf32>
    tpu.vector_store %arg10[%c0_36, %c0_37], %75 {strides = array<i32>} : memref<8x1xf32, #tpu.memory_space<vmem>>, vector<8x1xf32>,
    %c0_38 = arith.constant 0 : index
    %c0_39 = arith.constant 0 : index
    %77 = vector.load %arg9[%c0_38, %c0_39] : memref<8x1xf32, #tpu.memory_space<vmem>>, vector<8x1xf32>
    tpu.vector_store %arg9[%c0_38, %c0_39], %59 {strides = array<i32>} : memref<8x1xf32, #tpu.memory_space<vmem>>, vector<8x1xf32>,
    %c1_i32 = arith.constant 1 : i32
    %78 = arith.cmpi eq, %arg1, %c1_i32 : i32
    %79 = arith.extui %78 : i1 to i32
    %c0_i32_40 = arith.constant 0 : i32
    %80 = arith.cmpi ne, %79, %c0_i32_40 : i32
    scf.if %80 {
      %c0_41 = arith.constant 0 : index
      %c0_42 = arith.constant 0 : index
      %81 = vector.load %arg7[%c0_41, %c0_42] : memref<8x1xf32, #tpu.memory_space<vmem>>, vector<8x1xf32>
      %c0_43 = arith.constant 0 : index
      %c0_44 = arith.constant 0 : index
      %82 = vector.load %arg8[%c0_43, %c0_44] : memref<8x1xf32, #tpu.memory_space<vmem>>, vector<8x1xf32>
      %83 = math.log %82 : vector<8x1xf32>
      %84 = arith.addf %81, %83 : vector<8x1xf32>
      %c0_45 = arith.constant 0 : index
      %c0_46 = arith.constant 0 : index
      %85 = vector.load %arg9[%c0_45, %c0_46] : memref<8x1xf32, #tpu.memory_space<vmem>>, vector<8x1xf32>
      %c0_47 = arith.constant 0 : index
      %c0_48 = arith.constant 0 : index
      %86 = vector.load %arg10[%c0_47, %c0_48] : memref<8x1xf32, #tpu.memory_space<vmem>>, vector<8x1xf32>
      %87 = math.log %86 : vector<8x1xf32>
      %88 = arith.addf %85, %87 : vector<8x1xf32>
      %c0_49 = arith.constant 0 : index
      %c0_50 = arith.constant 0 : index
      %89 = vector.load %arg11[%c0_49, %c0_50] : memref<8x1xf32, #tpu.memory_space<vmem>>, vector<8x1xf32>
      %90 = arith.subf %84, %89 : vector<8x1xf32>
      %91 = arith.subf %88, %89 : vector<8x1xf32>
      %92 = arith.addf %90, %91 : vector<8x1xf32>
      %93 = vector.shape_cast %92 : vector<8x1xf32> to vector<1x8x1xf32>
      %cst_51 = arith.constant dense<0.000000e+00> : vector<1xf32>
      %94 = vector.multi_reduction <add>, %93, %cst_51 [1, 2] : vector<1x8x1xf32> to vector<1xf32>
      %95 = vector.shape_cast %94 : vector<1xf32> to vector<1x1x1xf32>
      %96 = vector.extract %95[0, 0, 0] : f32 from vector<1x1x1xf32>
      %97 = vector.broadcast %96 : f32 to vector<1x1xf32>
      %98 = vector.shape_cast %97 : vector<1x1xf32> to vector<1x1xf32>
      %99 = vector.broadcast %98 : vector<1x1xf32> to vector<8x128xf32>
      %c0_52 = arith.constant 0 : index
      %c0_53 = arith.constant 0 : index
      %100 = vector.load %arg6[%c0_52, %c0_53] : memref<8x128xf32, #tpu.memory_space<vmem>>, vector<8x128xf32>
      tpu.vector_store %arg6[%c0_52, %c0_53], %99 {strides = array<i32>} : memref<8x128xf32, #tpu.memory_space<vmem>>, vector<8x128xf32>,
    } else {
    }
    return
  }
  func.func @transform_0(%arg0: i32, %arg1: i32) -> (i32, i32) {
    %c0_i32 = arith.constant 0 : i32
    %c0_i32_0 = arith.constant 0 : i32
    return %arg0, %c0_i32 : i32, i32
  }
  func.func @transform_1(%arg0: i32, %arg1: i32) -> (i32, i32) {
    %c0_i32 = arith.constant 0 : i32
    %c0_i32_0 = arith.constant 0 : i32
    return %arg0, %c0_i32 : i32, i32
  }
  func.func @transform_2(%arg0: i32, %arg1: i32) -> (i32, i32) {
    %c0_i32 = arith.constant 0 : i32
    %c0_i32_0 = arith.constant 0 : i32
    return %arg1, %c0_i32 : i32, i32
  }
  func.func @transform_3(%arg0: i32, %arg1: i32) -> (i32, i32) {
    %c0_i32 = arith.constant 0 : i32
    %c0_i32_0 = arith.constant 0 : i32
    return %arg1, %c0_i32 : i32, i32
  }
  func.func @transform_4(%arg0: i32, %arg1: i32) -> (i32, i32) {
    %c0_i32 = arith.constant 0 : i32
    %c0_i32_0 = arith.constant 0 : i32
    return %arg0, %c0_i32 : i32, i32
  }
}

</mosaic_0001>

<bundles_post_ra>
// kernel: tpu_custom_call.1
= control target key start
LH: loop header
LB: loop body
LE: loop exit
PB: predicated region body
PF: predicated region fallthrough
CT: control target
= control target key end

     0   :  { %s1605_s0 = inlined_call_operand.hbm [shape: bf16[16,32], index: 0, kind: input, shape index: {}]   ;;  %s1606_s1 = inlined_call_operand.hbm [shape: bf16[16,32], index: 1, kind: input, shape index: {}]   ;;  %s1607_s2 = inlined_call_operand.hbm [shape: bf16[16,32], index: 2, kind: input, shape index: {}]   ;;  %s1608_s3 = inlined_call_operand.vmem [shape: bf16[16,32], index: 3, kind: input, shape index: {}]   ;;  %s1609_s4 = inlined_call_operand.hbm [shape: f32[16,128], index: 4, kind: output, shape index: {}]  }
   0x1   :  { %1623 = sst [smem:[#allocation22_spill]] %s1605_s0 }
   0x2   :  { %1624 = sst [smem:[#allocation23_spill]] %s1606_s1 }
   0x3   :  { %1625 = sst [smem:[#allocation24_spill]] %s1609_s4 }
   0x4   :  { %9 = vsyncpa [#allocation8], 0 }
   0x5   :  { %11 = vsyncpa [#allocation8 + $0x1], 0 }
   0x6   :  { %12 = vsyncpa [#allocation11], 0 }
   0x7   :  { %14 = vsyncpa [#allocation11 + $0x1], 0 }
   0x8   :  { %15 = vsyncpa [#allocation9], 0 }
   0x9   :  { %17 = vsyncpa [#allocation9 + $0x1], 0  ;;  %s1230_s15 = smov 0   ;;  %s1232_s16 = smov 0  }
   0xa   :  { %s1234_s17 = smov 0   ;;  %s1236_s18 = smov 0  }
   0xb   :  { %s1238_s19 = smov 0   ;;  %s1240_s20 = smov 0  }
   0xc   :  { %s1242_s21 = smov 0   ;;  %s1244_s22 = smov 0  }
   0xd   :  { %s1246_s23 = smov 0   ;;  %s1248_s24 = smov 0  }
   0xe   :  { %s1250_s25 = smov 0  }
   0xf LB: > { %1626 = sst [smem:[#allocation18_spill]] %s1166_s18  ;;  %s1286_s26 = sadd.s32 4294967295, %s1194_s25   ;;  %s1194_s25 = sphi %s1250_s25, %s23_s25   ;;  %s1190_s24 = sphi %s1248_s24, %s1666_s24   ;;  %s1186_s23 = sphi %s1246_s23, %s1665_s23   ;;  %s1182_s22 = sphi %s1244_s22, %s1664_s22   ;;  %s1178_s21 = sphi %s1242_s21, %s1663_s21   ;;  %s1174_s20 = sphi %s1240_s20, %s1662_s20   ;;  %s1170_s19 = sphi %s1238_s19, %s1661_s19   ;;  %s1166_s18 = sphi %s1236_s18, %s1660_s18   ;;  %s1162_s17 = sphi %s1234_s17, %s1659_s17   ;;  %s1158_s16 = sphi %s1232_s16, %s1658_s16   ;;  %s1154_s15 = sphi %s1230_s15, %s1657_s15  }
  0x10   : > { %s778_s27 = sadd.s32 4294967294, %s1194_s25   ;;  %p49_p0 = scmp.ne.s32.totalorder %s1174_s20, %s1170_s19 }
  0x11   : > { %p1616_p1 = scmp.eq.s32.totalorder %s1194_s25, 0  ;;  %p55_p2 = scmp.ne.s32.totalorder %s1170_s19, %s1166_s18 }
  0x12   : > { %p1615_p3 = scmp.eq.s32.totalorder %s1286_s26, 0  ;;  %p157_p5 = scmp.eq.s32.totalorder %s1286_s26, 3 }
  0x13   : > { %p51_p4 = por %p1616_p1, %p49_p0  ;;  %p163_p7 = scmp.eq.s32.totalorder %s778_s27, 3 }
  0x14   : > { %p1302_p6 = por %p1615_p3, %p55_p2  ;;  %p1306_p8 = por %p157_p5, %p49_p0 }
  0x15   : > { %p1310_p9 = por %p163_p7, %p55_p2  ;;  %p1614_p10 = scmp.lt.s32.totalorder %s1194_s25, 4 }
  0x16   : > { %s1627_s30 = scalar_select %p1302_p6, 1, 0 }
  0x17   : > { %s1628_s5 = scalar_select %p1306_p8, 1, 0 }
  0x18   : > { %s1630_s6 = scalar_select %p1310_p9, 1, 0 }
  0x19   : > { %1629 = sst [smem:[#allocation19_spill]] %s1628_s5  ;;  %s1610_s7 = sand.u32 1, %s1174_s20  }
  0x1a   : > { %1631 = sst [smem:[#allocation20_spill]] %s1630_s6  ;;  %s1611_s8 = sshll.u32 %s1190_s24, 6 }
  0x1b   : > { %s1319_s9 = sshll.u32 %s1610_s7, 2  ;;  %p1323_p11 = pnand %p1614_p10, %p51_p4 }
  0x1c   : > { %s201_s11 = sand.u32 1, %s1194_s25   ;;  %s1633_s1 = sld [smem:[#allocation23_spill]] }
  0x1d   : > { %s205_s27 = scalar_lea.vmem [#allocation10], %s1319_s9  ;;  %s1339_s28 = scalar_lea.sflag [#allocation11], %s201_s11 }
  0x1e   : > { %s212_s29 = sshll.u32 %s205_s27, 4  ;;  %p976_p0 = pneg %p1323_p11  ;;  %s1336_s29 = int_to_ptr.vmem [resolvable:$true] %s212_s29 }
  0x22   : > { %s1333_s14 = scalar_lea.hbm %s1633_s1, %s1611_s8  ;;  %s979_s8 = scalar_lea.hbm %s1633_s1, 128 }
  0x23   : > { %s974_s7 = scalar_lea.hbm %s1333_s14, 64  ;;  %p980_p5 = scmp.lt.u32.totalorder %s1333_s14, %s1633_s1 }
  0x24   : > { %p975_p13 = scmp.ne.s32.totalorder %s1333_s14, %s974_s7  ;;  %p981_p7 = scmp.lt.u32.totalorder %s979_s8, %s974_s7 }
  0x25   : > { %p983_p3 = scmp.lt.u32.totalorder %s974_s7, %s1333_s14 }
  0x26   : > { %p977_p2 = pnand %p976_p0, %p975_p13  ;;  %p982_p10 = por %p981_p7, %p980_p5 }
  0x28   : > { %p978_p4 = pneg %p977_p2  ;;  %p984_p1 = por %p983_p3, %p982_p10 }
  0x2a   : > { %p985_p12 = pnand %p984_p1, %p978_p4 }
  0x2c   : > { %988 = shalt.err (!%p985_p12)
}
  0x2d   : > { %s989_s11 = scalar_lea.vmem %s1336_s29, 64  ;;  %s1196_s27 = smov [#allocation10]  }
  0x2e   : > { %p990_p13 = scmp.ne.s32.totalorder %s1336_s29, %s989_s11  ;;  %s994_s12 = sshll.u32 %s1196_s27, 4  ;;  %s995_s12 = int_to_ptr.vmem [resolvable:$false] %s994_s12 }
  0x2f   : > { %s996_s18 = scalar_lea.vmem %s995_s12, 128  ;;  %p997_p8 = scmp.lt.s32.totalorder %s1336_s29, %s995_s12 }
  0x30   : > { %p992_p2 = pnand %p990_p13, %p976_p0  ;;  %p998_p5 = scmp.lt.s32.totalorder %s996_s18, %s989_s11 }
  0x32   : > { %p993_p9 = pneg %p992_p2  ;;  %p999_p7 = por %p998_p5, %p997_p8 }
  0x34   : > { %p1000_p3 = pnand %p999_p7, %p993_p9 }
  0x36   : > { %1003 = shalt.err (!%p1000_p3)
}
  0x37   : > { %853 = dma.hbm_to_vmem [thread:$0]  (!%p1323_p11), %s1333_s14, 64, %s1336_s29, %s1339_s28  }
  0x38   : > { %p242_p1 = scmp.lt.s32.totalorder %s1194_s25, 5  ;;  %p1634_p10 = scmp.ge.s32.totalorder %s1194_s25, 1 }
  0x39   : > { %s1636_s7 = sshll.u32 %s1190_s24, 6  ;;  %s1637_s0 = sld [smem:[#allocation22_spill]] }
  0x3a   : > { %p1370_p12 = pnand %p1634_p10, %p242_p1  ;;  %s187_s27 = scalar_lea.vmem [#allocation7], %s1319_s9 }
  0x3b   : > { %s194_s12 = sshll.u32 %s187_s27, 4  ;;  %s1638_s29 = sand.u32 1, %s1174_s20   ;;  %s195_s12 = int_to_ptr.vmem [resolvable:$true] %s194_s12 }
  0x3c   : > { %s1635_s6 = scalar_select %p1370_p12, 1, 0 }
  0x3d   : > { %s184_s14 = scalar_lea.sflag [#allocation8], %s1638_s29 }
  0x3f   : > { %s1379_s11 = scalar_lea.hbm %s1637_s0, %s1636_s7  ;;  %s1009_s7 = scalar_lea.hbm %s1637_s0, 128 }
  0x40   : > { %s1004_s18 = scalar_lea.hbm %s1379_s11, 64  ;;  %p1010_p13 = scmp.lt.u32.totalorder %s1379_s11, %s1637_s0 }
  0x41   : > { %p1005_p8 = scmp.ne.s32.totalorder %s1379_s11, %s1004_s18  ;;  %p1011_p2 = scmp.lt.u32.totalorder %s1009_s7, %s1004_s18 }
  0x42   : > { %p1013_p7 = scmp.lt.u32.totalorder %s1004_s18, %s1379_s11 }
  0x43   : > { %p1007_p9 = pnand %p1005_p8, %p976_p0  ;;  %p1012_p5 = por %p1011_p2, %p1010_p13 }
  0x45   : > { %p1008_p4 = pneg %p1007_p9  ;;  %p1014_p3 = por %p1013_p7, %p1012_p5 }
  0x47   : > { %p1015_p1 = pnand %p1014_p3, %p1008_p4 }
  0x49   : > { %1018 = shalt.err (!%p1015_p1)
}
  0x4a   : > { %s1019_s9 = scalar_lea.vmem %s195_s12, 64  ;;  %s1197_s27 = smov [#allocation7]  }
  0x4b   : > { %p1020_p10 = scmp.ne.s32.totalorder %s195_s12, %s1019_s9  ;;  %s1024_s1 = sshll.u32 %s1197_s27, 4  ;;  %s1025_s1 = int_to_ptr.vmem [resolvable:$false] %s1024_s1 }
  0x4c   : > { %s1026_s4 = scalar_lea.vmem %s1025_s1, 128  ;;  %p1027_p6 = scmp.lt.s32.totalorder %s195_s12, %s1025_s1 }
  0x4d   : > { %p1022_p8 = pnand %p1020_p10, %p976_p0  ;;  %p1028_p12 = scmp.lt.s32.totalorder %s1026_s4, %s1019_s9 }
  0x4f   : > { %p1023_p9 = pneg %p1022_p8  ;;  %p1029_p2 = por %p1028_p12, %p1027_p6 }
  0x51   : > { %p1030_p13 = pnand %p1029_p2, %p1023_p9 }
  0x53   : > { %1033 = shalt.err (!%p1030_p13)
}
  0x54   : > { %850 = dma.hbm_to_vmem [thread:$0]  (!%p1323_p11), %s1379_s11, 64, %s195_s12, %s184_s14  }
  0x55   : > { %s32_s29 = sadd.s32 1, %s1186_s23  ;;  %s94_s18 = sadd.s32 1, %s1162_s17 }
  0x56   : > { %p33_p6 = scmp.ge.s32.totalorder %s32_s29, 2  ;;  %p101_p0 = scmp.ne.s32.totalorder %s1162_s17, %s1158_s16 }
  0x57   : > { %p107_p12 = scmp.ne.s32.totalorder %s1158_s16, %s1154_s15  ;;  %s1640_s10 = sadd.s32 1, %s1190_s24 }
  0x58   : > { %s1668_s29 = smov (%p33_p6, %s32_s29), 0  ;;  %s1670_s10 = smov (!%p33_p6, %s1640_s10), %s1190_s24 }
  0x59   : > { %1639 = sst [smem:[#allocation21_spill]] %s1668_s29  ;;  %s91_s7 = ssub.s32 %s1186_s23, %s1668_s29 }
  0x5a   : > { %p1641_p4 = scmp.eq.s32.totalorder %s1194_s25, 0  ;;  %p37_p11 = scmp.ge.s32.totalorder %s1670_s10, 2 }
  0x5b   : > { %p92_p7 = scmp.eq.s32.totalorder %s91_s7, 0  ;;  %p1643_p3 = scmp.eq.s32.totalorder %s1286_s26, 0 }
  0x5c   : > { %p1418_p5 = por %p101_p0, %p1641_p4  ;;  %s221_s11 = sand.u32 1, %s1162_s17  }
  0x5d   : > { %p1424_p1 = por %p107_p12, %p1643_p3  ;;  %s1672_s10 = smov (%p37_p11, %s1670_s10), 0 }
  0x5e   : > { %s1432_s12 = scalar_select %p92_p7, %s1162_s17, %s94_s18  }
  0x5f   : > { %s39_s14 = ssub.s32 %s1190_s24, %s1672_s10  ;;  %s785_s13 = sshll.u32 %s221_s11, 2 }
  0x60   : > { %p40_p10 = scmp.eq.s32.totalorder %s39_s14, 0  ;;  %s786_s9 = sshll.u32 %s1186_s23, 6 }
  0x61   : > { %s223_s27 = scalar_lea.vmem [#allocation12], %s785_s13  ;;  %s1645_s4 = sadd.s32 1, %s1174_s20 }
  0x62   : > { %s230_s1 = sshll.u32 %s223_s27, 4  ;;  %s1445_s5 = scalar_lea.hbm %s1607_s2, %s786_s9  ;;  %s1447_s1 = int_to_ptr.vmem [resolvable:$true] %s230_s1 }
  0x63   : > { %s1440_s0 = scalar_select %p40_p10, %s1174_s20, %s1645_s4  }
  0x64   : > { %p1646_p8 = scmp.lt.s32.totalorder %s1194_s25, 4  ;;  %s1034_s11 = scalar_lea.hbm %s1445_s5, 64 }
  0x65   : > { %p1035_p2 = scmp.ne.s32.totalorder %s1445_s5, %s1034_s11  ;;  %s1039_s13 = scalar_lea.hbm %s1607_s2, 128 }
  0x66   : > { %p1453_p9 = pnand %p1646_p8, %p1418_p5  ;;  %p1040_p12 = scmp.lt.u32.totalorder %s1445_s5, %s1607_s2 }
  0x67   : > { %p1041_p4 = scmp.lt.u32.totalorder %s1039_s13, %s1034_s11  ;;  %p1043_p11 = scmp.lt.u32.totalorder %s1034_s11, %s1445_s5 }
  0x68   : > { %p1036_p13 = pneg %p1453_p9 }
  0x69   : > { %p1042_p5 = por %p1041_p4, %p1040_p12 }
  0x6a   : > { %p1037_p6 = pnand %p1036_p13, %p1035_p2 }
  0x6b   : > { %p1044_p7 = por %p1043_p11, %p1042_p5 }
  0x6c   : > { %p1038_p0 = pneg %p1037_p6 }
  0x6e   : > { %p1045_p3 = pnand %p1044_p7, %p1038_p0 }
  0x70   : > { %1048 = shalt.err (!%p1045_p3)
}
  0x71   : > { %s1049_s27 = scalar_lea.vmem %s1447_s1, 64  ;;  %s1198_s4 = smov [#allocation12]  }
  0x72   : > { %p1050_p10 = scmp.ne.s32.totalorder %s1447_s1, %s1049_s27  ;;  %s1054_s7 = sshll.u32 %s1198_s4, 4  ;;  %s1055_s7 = int_to_ptr.vmem [resolvable:$false] %s1054_s7 }
  0x73   : > { %s1056_s29 = scalar_lea.vmem %s1055_s7, 128  ;;  %p1057_p6 = scmp.lt.s32.totalorder %s1447_s1, %s1055_s7 }
  0x74   : > { %p1052_p8 = pnand %p1050_p10, %p1036_p13  ;;  %p1058_p12 = scmp.lt.s32.totalorder %s1056_s29, %s1049_s27 }
  0x76   : > { %p1053_p2 = pneg %p1052_p8  ;;  %p1059_p4 = por %p1058_p12, %p1057_p6 }
  0x78   : > { %p1060_p5 = pnand %p1059_p4, %p1053_p2 }
  0x7a   : > { %1063 = shalt.err (!%p1060_p5)
}
  0x7b   : > { %856 = dma.hbm_to_vmem [thread:$0]  (!%p1453_p9), %s1445_s5, 64, %s1447_s1, %s1339_s28  }
  0x7c   : > { %p1648_p0 = scmp.ne.s32.totalorder %s1635_s6, 0 }
  0x7d   : > { %s1486_s11 = sand.u32 (!%p1648_p0), 1, %s1170_s19   ;;  %p1649_p13 = scmp.ne.s32.totalorder (!%p1648_p0), %s1627_s30, 0 }
  0x7e   : > { %246 = sbr.rel (%p1648_p0) target bundleno = 1229 (0x4cd), region = 36  ;;  %s788_s14 = sshll.u32 (!%p1648_p0), %s1486_s11, 2 }
  0x7f   : > { %s249_s13 = scalar_lea.sflag (!%p1648_p0), [#allocation8], %s1486_s11  ;;  %s252_s8 = scalar_lea.vmem (!%p1648_p0), [#allocation7], %s788_s14 }
  0x85   : > { %1137 = dma.done.wait (%p1649_p13), %s249_s13, 64  }
  0x86   : > { %1139 = vsyncadd (%p1649_p13), %s249_s13, 4294967232  ;;  %s257_s28 = sand.u32 1, %s1286_s26   ;;  %s261_s6 = scalar_lea.vmem [#allocation10], %s788_s14 }
  0x87   : > { %s258_s5 = scalar_lea.sflag [#allocation11], %s257_s28 }
  0x88   : > { %1141 = dma.done.wait (%p1649_p13), %s258_s5, 64  }
  0x89   : > { %1143 = vsyncadd (%p1649_p13), %s258_s5, 4294967232  ;;  %s268_s1 = sand.u32 1, %s1158_s16  }
  0x8a   : > { %s1500_s18 = sshll.u32 %s268_s1, 2 }
  0x8b   : > { %s270_s9 = scalar_lea.vmem [#allocation12], %s1500_s18 }
  0x8c   : > { %1145 = dma.done.wait (%p1424_p1), %s258_s5, 64  }
  0x8d   : > { %1147 = vsyncadd (%p1424_p1), %s258_s5, 4294967232  ;;  %s791_s26 = sshll.u32 %s1486_s11, 3  ;;  %p309_p9 = scmp.lt.s32.totalorder %s1178_s21, 1  ;;  %v315_v0 = vld [vmem:[%s252_s8] sm:$0xf] }
  0x8e   : > { %v316_v1 = vld [vmem:[%s261_s6] sm:$0xf]  ;;  %v317_v2 = vmul.bf16 1073758208, %v315_v0  ;;  %s1513_s14 = scalar_lea.vmem [#allocation13], %s791_s26  ;;  %p793_p11 = scmp.ne.s32.totalorder %s1178_s21, 0 }
  0x8f   : > { %s310_s27 = scalar_select %p309_p9, %s1178_s21, 1  ;;  %v318_v3 = vmul.bf16 1073758208, %v316_v1 }
  0x90   : > { %322 = sbr.rel (%p793_p11) target bundleno = 294 (0x126), region = 52  ;;  %v328_v4 = vunpack.c.l.bf16 (!%p793_p11), %v315_v0  ;;  %v329_v5 = vunpack.c.l.bf16 (!%p793_p11), %v316_v1  ;;  %vm323_vm0 = vcmask (!%p793_p11), 7168   ;;  %vm331_vm1 = vcmask (!%p793_p11), 261120  }
  0x91   : > { %s792_s30 = sshll.u32 %s310_s27, 2  ;;  %v1199_v7 = vmov (!%p793_p11), -inf   ;;  %v1200_v8 = vmov (!%p793_p11), 0.0  }
  0x92   : > { %s312_s29 = scalar_lea.vmem %s1608_s3, %s792_s30  ;;  %v330_v6 = vmul.f32 (!%p793_p11), %v329_v5, %v328_v4  ;;  %324 = vst.msk [vmem:[#allocation2] sm:$0xff] (!%p793_p11), %vm323_vm0, %v1199_v7  ;;  %325 = vst.msk [vmem:[#allocation3] sm:$0xff] (!%p793_p11), %vm323_vm0, %v1200_v8 }
  0x93   : > { %326 = vst.msk [vmem:[#allocation4] sm:$0xff] (!%p793_p11), %vm323_vm0, %v1199_v7  ;;  %327 = vst.msk [vmem:[#allocation5] sm:$0xff] (!%p793_p11), %vm323_vm0, %v1200_v8 }
  0x94   : > { %v332_v9 = vsel (!%p793_p11), %vm331_vm1, %v330_v6, 0.0 }
  0x95   : > { %333 = vadd.xlane.f32.xlu0 (!%p793_p11), %v332_v9 }
 0x122   : > { %v334_v10 = vpop.xlane.xlu0 %333 }
 0x123   : > { %v335_v11 = vmul.f32 2.0, %v334_v10 }
 0x125   : > { %336 = vst.msk [vmem:[#allocation6] sm:$0xff] %vm323_vm0, %v335_v11 }
 0x126 PF: > { %v337_v12 = vld [vmem:[%s270_s9] sm:$0xf]  ;;  %vm339_vm2 = vcmask 261120   ;;  %v338_v13 = vld [vmem:[%s312_s29] sm:$0xf]  ;;  %v1201_v14 = vmov 0.0   ;;  %v513_v17 = vlaneseq }
 0x127   : > { %813 = vmatprep.subr.bf16.mxu0 %v1201_v14  ;;  %v344_v15 = vsel %vm339_vm2, %v337_v12, 0  ;;  %819 = vmatprep.subr.bf16.mxu1 %v1201_v14  ;;  %v387_v16 = vsel %vm339_vm2, %v338_v13, 0  ;;  %vm1202_vm3 = vmmov 0   ;;  %s798_s15 = sshll.u32 %s1182_s22, 3  ;;  %s799_s13 = sshll.u32 %s1178_s21, 3  ;;  %vm526_vm5 = vcmask 64512  }
 0x128   : > { %814 = vmatpush3.bf16.xpose.msra.mxu0 %v344_v15  ;;  %820 = vmatpush3.bf16.xpose.msra.mxu1 %v387_v16  ;;  %v514_v18 = vshrl.u32 %v513_v17, 7  ;;  %v519_v19 = vand.u32 127, %v513_v17  ;;  %v515_v20 = vstv %s798_s15  ;;  %v520_v21 = vstv %s799_s13  ;;  %v525_v48 = vld [vmem:[#allocation2] sm:$0xff]  ;;  %p800_p1 = scmp.ne.s32.totalorder %s1178_s21, 1 }
 0x129   : > { %815 = vmatprep.mubr.msk.bf16.mxu0 %vm1202_vm3, %v1201_v14  ;;  %821 = vmatprep.mubr.msk.bf16.mxu1 %vm1202_vm3, %v1201_v14  ;;  %v1203_v46 = vmov 0   ;;  %vm559_vm6 = vcmask 7168   ;;  %v562_v54 = vld [vmem:[#allocation4] sm:$0xff] }
 0x12a   : > { %825 = vmatprep.subr.bf16.mxu0 %v1201_v14  ;;  %831 = vmatprep.subr.bf16.mxu1 %v1201_v14  ;;  %v516_v22 = vadd.s32 %v515_v20, %v514_v18  ;;  %v521_v23 = vadd.s32 %v520_v21, %v519_v19 }
 0x12b   : > { %956 = vset.pattern.permute.xlu0 %v1203_v46  ;;  %957 = vset.pattern.permute.xlu1 %v1203_v46 }
 0x12c   : > { %vm522_vm4 = vcmp.eq.s32.totalorder %v516_v22, %v521_v23 }
 0x12f   : > { %816 = vmatmul.mubr.msk.bf16.vlgmr.msra.gmra.mrb[0].mxu0 %vm339_vm2, %v317_v2  ;;  %822 = vmatmul.mubr.msk.bf16.vlgmr.msra.gmra.mrb[0].mxu1 %vm339_vm2, %v317_v2 }
 0x130   : > { %826 = vmatpush3.bf16.xpose.msra.mxu0 %v344_v15  ;;  %832 = vmatpush3.bf16.xpose.msra.mxu1 %v387_v16  ;;  %v556_v16 = vld [vmem:[#allocation3] sm:$0xff] }
 0x131   : > { %827 = vmatprep.mubr.msk.bf16.mxu0 %vm1202_vm3, %v1201_v14  ;;  %833 = vmatprep.mubr.msk.bf16.mxu1 %vm1202_vm3, %v1201_v14 }
 0x137   : > { %828 = vmatmul.mubr.msk.bf16.vlgmr.msra.gmra.mrb[4].mxu0 %vm339_vm2, %v318_v3  ;;  %834 = vmatmul.mubr.msk.bf16.vlgmr.msra.gmra.mrb[4].mxu1 %vm339_vm2, %v318_v3 }
 0x202   : > { %v380_v24 = vpop.f32.mrb[0].mxu0  ;;  %v423_v25 = vpop.f32.mrb[0].mxu1 }
 0x203   : > { %v523_v26 = vsel %vm522_vm4, -inf, %v380_v24  ;;  %v817_v27 = vpop.f32.mrb[1].mxu0  ;;  %v823_v28 = vpop.f32.mrb[1].mxu1  ;;  %v530_v34 = vsel %vm526_vm5, %v423_v25, -inf  ;;  %v592_v24 = vld [vmem:[#allocation5] sm:$0xff] }
 0x204   : > { %v383_v29 = vpop.f32.mrb[2].mxu0  ;;  %v426_v30 = vpop.f32.mrb[2].mxu1  ;;  %v527_v31 = vsel %vm526_vm5, %v523_v26, -inf }
 0x205   : > { %528 = vmax.xlane.f32.xlu0 %v527_v31  ;;  %v818_v32 = vpop.f32.mrb[3].mxu0  ;;  %v824_v33 = vpop.f32.mrb[3].mxu1 }
 0x209   : > { %531 = vmax.xlane.f32.xlu0 %v530_v34 }
 0x20a   : > { %v466_v35 = vpop.f32.mrb[4].mxu0  ;;  %v506_v36 = vpop.f32.mrb[4].mxu1 }
 0x20b   : > { %v829_v37 = vpop.f32.mrb[5].mxu0  ;;  %v524_v38 = vsel %vm522_vm4, -inf, %v506_v36  ;;  %v835_v39 = vpop.f32.mrb[5].mxu1  ;;  %v563_v40 = vsel %vm526_vm5, %v466_v35, -inf }
 0x20c   : > { %564 = vmax.xlane.f32.xlu1 %v563_v40  ;;  %v469_v41 = vpop.f32.mrb[6].mxu0  ;;  %v509_v42 = vpop.f32.mrb[6].mxu1  ;;  %v566_v45 = vsel %vm526_vm5, %v524_v38, -inf  ;;  %v611_v37 = vld [vmem:[#allocation6] sm:$0xff] (!%p800_p1) }
 0x20d   : > { %v830_v43 = vpop.f32.mrb[7].mxu0  ;;  %v836_v44 = vpop.f32.mrb[7].mxu1 }
 0x210   : > { %567 = vmax.xlane.f32.xlu1 %v566_v45 }
 0x292   : > { %v529_v47 = vpop.xlane.xlu0 %528 }
 0x296   : > { %v532_v49 = vpop.xlane.xlu0 %531 }
 0x297   : > { %v533_v50 = vmax.f32 %v529_v47, %v532_v49 }
 0x299   : > { %v534_v51 = vmax.f32 %v525_v48, %v533_v50  ;;  %v565_v52 = vpop.xlane.xlu1 %564 }
 0x29b   : > { %v535_v53 = vsub.f32 %v525_v48, %v534_v51  ;;  %561 = vst.msk [vmem:[#allocation2] sm:$0xff] %vm559_vm6, %v534_v51  ;;  %540 = vperm.xlu0 %956, %v534_v51  }
 0x29d   : > { %v568_v55 = vpop.xlane.xlu1 %567  ;;  %v536_v13 = vmul.f32 1.442695, %v535_v53 }
 0x29e   : > { %v569_v56 = vmax.f32 %v565_v52, %v568_v55 }
 0x2a0   : > { %v570_v57 = vmax.f32 %v562_v54, %v569_v56 }
 0x2a2   : > { %v571_v58 = vsub.f32 %v562_v54, %v570_v57  ;;  %596 = vst.msk [vmem:[#allocation4] sm:$0xff] %vm559_vm6, %v570_v57  ;;  %576 = vperm.xlu1 %957, %v570_v57   ;;  %v601_v32 = vld [vmem:[#allocation2] sm:$0xff] (!%p800_p1) }
 0x2a4   : > { %v572_v14 = vmul.f32 1.442695, %v571_v58 }
 0x31a   : > { %v541_v59 = vpop.permute.xlu0 %540 }
 0x31b   : > { %v543_v60 = vsub.f32 %v523_v26, %v541_v59  ;;  %v549_v61 = vsub.f32 %v423_v25, %v541_v59 }
 0x31d   : > { %v544_v62 = vmul.f32 1.442695, %v543_v60  ;;  %v550_v63 = vmul.f32 1.442695, %v549_v61 }
 0x31f   : > { %958 = vpow2.f32 %v544_v62 }
 0x320   : > { %960 = vpow2.f32 %v550_v63 }
 0x321   : > { %v577_v0 = vpop.permute.xlu1 %576 }
 0x322   : > { %v579_v1 = vsub.f32 %v466_v35, %v577_v0  ;;  %v585_v2 = vsub.f32 %v524_v38, %v577_v0  ;;  %v606_v35 = vld [vmem:[#allocation4] sm:$0xff] (!%p800_p1) }
 0x324   : > { %v580_v3 = vmul.f32 1.442695, %v579_v1  ;;  %v586_v4 = vmul.f32 1.442695, %v585_v2 }
 0x326   : > { %962 = vpow2.f32 %v580_v3 }
 0x327   : > { %964 = vpow2.f32 %v586_v4 }
 0x328   : > { %966 = vpow2.f32 %v536_v13 }
 0x329   : > { %v959_v5 = vpop.eup %958  ;;  %968 = vpow2.f32 %v572_v14 }
 0x32a   : > { %v961_v6 = vpop.eup %960  ;;  %v546_v7 = vsel %vm526_vm5, %v959_v5, 0.0 }
 0x32b   : > { %v552_v8 = vsel %vm526_vm5, %v961_v6, 0.0  ;;  %547 = vadd.xlane.f32.xlu1 %v546_v7 }
 0x32c   : > { %553 = vadd.xlane.f32.xlu0 %v552_v8 }
 0x330   : > { %v963_v9 = vpop.eup %962 }
 0x331   : > { %v582_v10 = vsel %vm526_vm5, %v963_v9, 0.0  ;;  %v965_v11 = vpop.eup %964 }
 0x332   : > { %583 = vadd.xlane.f32.xlu1 %v582_v10  ;;  %v588_v12 = vsel %vm526_vm5, %v965_v11, 0.0  ;;  %v967_v15 = vpop.eup %966 }
 0x333   : > { %v557_v19 = vmul.f32 %v967_v15, %v556_v16  ;;  %v969_v23 = vpop.eup %968 }
 0x334   : > { %v593_v27 = vmul.f32 %v969_v23, %v592_v24 }
 0x336   : > { %589 = vadd.xlane.f32.xlu1 %v588_v12 }
 0x3b8   : > { %v548_v17 = vpop.xlane.xlu1 %547 }
 0x3b9   : > { %v554_v18 = vpop.xlane.xlu0 %553 }
 0x3ba   : > { %v555_v20 = vadd.f32 %v554_v18, %v548_v17 }
 0x3bc   : > { %v558_v21 = vadd.f32 %v557_v19, %v555_v20 }
 0x3be   : > { %560 = vst.msk [vmem:[#allocation3] sm:$0xff] %vm559_vm6, %v558_v21 }
 0x3bf   : > { %v584_v22 = vpop.xlane.xlu1 %583 }
 0x3c2   : > { %600 = sbr.rel (%p800_p1) target bundleno = 1202 (0x4b2), region = 56 }
 0x3c3   : > { %v590_v25 = vpop.xlane.xlu1 %589 }
 0x3c4   : > { %v591_v26 = vadd.f32 %v590_v25, %v584_v22 }
 0x3c5   : > { %v602_v29 = vld [vmem:[#allocation3] sm:$0xff] (!%p800_p1) }
 0x3c6   : > { %v594_v28 = vadd.f32 %v593_v27, %v591_v26  ;;  %970 = vlog2.f32 (!%p800_p1), %v602_v29 }
 0x3c8   : > { %595 = vst.msk [vmem:[#allocation5] sm:$0xff] %vm559_vm6, %v594_v28 }
 0x3cf   : > { %v607_v30 = vld [vmem:[#allocation5] sm:$0xff] }
 0x3d0   : > { %972 = vlog2.f32 %v607_v30  ;;  %v971_v31 = vpop.eup %970 }
 0x3d1   : > { %v604_v34 = vmul.f32 0.6931472, %v971_v31 }
 0x3d3   : > { %v605_v38 = vadd.f32 %v604_v34, %v601_v32 }
 0x3d5   : > { %v612_v40 = vsub.f32 %v605_v38, %v611_v37 }
 0x3da   : > { %v973_v33 = vpop.eup %972 }
 0x3db   : > { %v609_v36 = vmul.f32 0.6931472, %v973_v33 }
 0x3dd   : > { %v610_v39 = vadd.f32 %v609_v36, %v606_v35 }
 0x3df   : > { %v613_v41 = vsub.f32 %v610_v39, %v611_v37 }
 0x3e1   : > { %v614_v42 = vadd.f32 %v613_v41, %v612_v40 }
 0x3e3   : > { %v615_v43 = vsel %vm559_vm6, %v614_v42, 0.0 }
 0x3e4   : > { %616 = vadd.xlane.f32.xlu0 %v615_v43 }
 0x471   : > { %v617_v44 = vpop.xlane.xlu0 %616 }
 0x472   : > { %v618_v45 = vrot.slane %v617_v44, 4 }
 0x474   : > { %v619_v46 = vadd.f32 %v618_v45, %v617_v44 }
 0x476   : > { %v620_v47 = vrot.slane %v619_v46, 2 }
 0x478   : > { %v621_v48 = vadd.f32 %v620_v47, %v619_v46 }
 0x47a   : > { %v622_v49 = vrot.slane %v621_v48, 1 }
 0x47c   : > { %v623_v50 = vadd.f32 %v622_v49, %v621_v48 }
 0x47e   : > { %837 = vpush %v623_v50 }
 0x4af   : > { %s838_s21 = spop %837 }
 0x4b0   : > { %v625_v51 = vstv %s838_s21 }
 0x4b1   : > { %626 = vst [vmem:[%s1513_s14] sm:$0xff] %v625_v51 }
 0x4b2 PF: > { %s1650_s8 = sld [smem:[#allocation19_spill]]  ;;  %s802_s28 = sshll.u32 %s1182_s22, 7 }
 0x4b3   : > { %s1651_s1 = sld [smem:[#allocation24_spill]]  ;;  %s641_s9 = sshll.u32 %s1513_s14, 4  ;;  %s642_s9 = int_to_ptr.vmem [resolvable:$true] %s641_s9 }
 0x4b4   : > { %s628_s26 = scalar_lea.sflag [#allocation9], %s1486_s11  ;;  %s1064_s27 = scalar_lea.vmem %s642_s9, 128 }
 0x4b5   : > { %p1065_p7 = scmp.ne.s32.totalorder %s642_s9, %s1064_s27  ;;  %s1204_s30 = smov [#allocation13]  }
 0x4b6   : > { %s1068_s4 = sshll.u32 %s1204_s30, 4  ;;  %s1069_s4 = int_to_ptr.vmem [resolvable:$false] %s1068_s4 }
 0x4b7   : > { %s1070_s7 = scalar_lea.vmem %s1069_s4, 256  ;;  %p1071_p2 = scmp.lt.s32.totalorder %s642_s9, %s1069_s4 }
 0x4b8   : > { %p1652_p3 = scmp.ne.s32.totalorder %s1650_s8, 0  ;;  %p1072_p6 = scmp.lt.s32.totalorder %s1070_s7, %s1064_s27 }
 0x4b9   : > { %s1547_s18 = scalar_lea.hbm %s1651_s1, %s802_s28 }
 0x4ba   : > { %p1066_p10 = pnand %p1065_p7, %p1652_p3  ;;  %p1073_p12 = por %p1072_p6, %p1071_p2 }
 0x4bc   : > { %p1067_p8 = pneg %p1066_p10 }
 0x4be   : > { %p1074_p4 = pnand %p1073_p12, %p1067_p8 }
 0x4c0   : > { %1077 = shalt.err (!%p1074_p4)
}
 0x4c1   : > { %s1078_s22 = scalar_lea.hbm %s1547_s18, 128  ;;  %s1082_s14 = scalar_lea.hbm %s1651_s1, 256 }
 0x4c2   : > { %p1079_p5 = scmp.ne.s32.totalorder %s1547_s18, %s1078_s22  ;;  %p1083_p9 = scmp.lt.u32.totalorder %s1547_s18, %s1651_s1 }
 0x4c3   : > { %p1084_p11 = scmp.lt.u32.totalorder %s1082_s14, %s1078_s22  ;;  %p1086_p7 = scmp.lt.u32.totalorder %s1078_s22, %s1547_s18 }
 0x4c4   : > { %p1080_p0 = pnand %p1079_p5, %p1652_p3 }
 0x4c5   : > { %p1085_p1 = por %p1084_p11, %p1083_p9 }
 0x4c6   : > { %p1081_p13 = pneg %p1080_p0 }
 0x4c7   : > { %p1087_p10 = por %p1086_p7, %p1085_p1 }
 0x4c9   : > { %p1088_p8 = pnand %p1087_p10, %p1081_p13 }
 0x4cb   : > { %1091 = shalt.err (!%p1088_p8)
}
 0x4cc   : > { %845 = dma.vmem_to_hbm [thread:$0]  (%p1652_p3), %s642_s9, 128, %s1547_s18, %s628_s26  }
 0x4cd PF: > { %s1653_s21 = sld [smem:[#allocation18_spill]]  ;;  %s1654_s28 = sld [smem:[#allocation20_spill]] }
 0x4ce   : > { %p862_p2 = scmp.ge.s32.totalorder %s1194_s25, 2 }
 0x4d3   : > { %s653_s5 = sand.u32 1, %s1653_s21   ;;  %p1655_p6 = scmp.ne.s32.totalorder %s1654_s28, 0 }
 0x4d4   : > { %s654_s6 = scalar_lea.sflag [#allocation9], %s653_s5 }
 0x4d5   : > { %p858_p12 = pnand %p862_p2, %p1655_p6 }
 0x4d7   : > { %1149 = dma.done.wait (!%p858_p12), %s654_s6, 128  }
 0x4d8   : > { %1151 = vsyncadd (!%p858_p12), %s654_s6, 4294967168  ;;  %s23_s25 = sadd.s32 1, %s1194_s25   ;;  %s1656_s8 = sld [smem:[#allocation21_spill]] }
 0x4d9   : > { %p20_p4 = scmp.ge.s32.totalorder %s23_s25, 6   ;;  %s1657_s15 = smov %s1158_s16 }
 0x4da   : > { %s1658_s16 = smov %s1162_s17  ;;  %s1659_s17 = smov %s1432_s12 }
 0x4db   : > { %s1660_s18 = smov %s1170_s19  ;;  %s1661_s19 = smov %s1174_s20 }
 0x4dc   : > { %s1662_s20 = smov %s1440_s0  ;;  %s1663_s21 = smov %s1186_s23 }
 0x4dd   : > { %s1664_s22 = smov %s1190_s24  ;;  %s1666_s24 = smov %s1672_s10 }
 0x4de   : > { %s1665_s23 = smov %s1656_s8  ;;  %22 = sbr.rel (!%p20_p4) target bundleno = 15 (0xf), region = 116 }
 0x4e5   :  { %659 = vsyncpa [#allocation8], 1 }
 0x4e6   :  { %661 = vsyncpa [#allocation8 + $0x1], 1 }
 0x4e7   :  { %662 = vsyncpa [#allocation11], 1 }
 0x4e8   :  { %664 = vsyncpa [#allocation11 + $0x1], 1 }
 0x4e9   :  { %665 = vsyncpa [#allocation9], 1 }
 0x4ea   :  { %667 = vsyncpa [#allocation9 + $0x1], 1 }

</bundles_post_ra>
